<compile_context>
chip_gen: v7x
topology: tpu7x:2x2x1
jax: 0.10.0
libtpu: 0.0.40
codegen_flags: <defaults>
</compile_context>

<pallas_src>
import functools

import jax
import jax.numpy as jnp
from jax.experimental import pallas as pl
from jax.experimental.pallas import tpu as pltpu


def _round_up(v, m):
    return -(-v // m) * m


def _vmem_budgets():
    """Returns (per-block target bytes, default vmem limit, max vmem limit)."""
    try:
        cap = getattr(pltpu.get_tpu_info(), "vmem_capacity_bytes", 0)
    except Exception:  # interpret mode / non-TPU tracing
        cap = 0
    if cap and cap <= 64 * 1024 * 1024:
        # v7x-class: 64 MiB VMEM per TC, ~3.2 TB/s HBM -> larger blocks + raised limit.
        return 30 * 1024 * 1024, 48 * 1024 * 1024, 56 * 1024 * 1024
    # v5e / v6e (128 MiB physical VMEM) and unknown fallback: explicit 32 MiB limit
    # keeps v5e's 16 MiB scoped default from being the binding constraint.
    return 22 * 1024 * 1024, 32 * 1024 * 1024, 100 * 1024 * 1024


def _choose_tiles(nb, cb, hw, itemsize, pack, target):
    """Pick (bn, kt, n_k, needs_mask, est_bytes) using padded VMEM footprints."""
    cb_sub = _round_up(cb, pack)    # sublane padding of CB inside the input block
    cb_lane = _round_up(cb, 128)    # lane padding of CB in outputs / scratch

    def est(bn, kt, multi):
        bn8 = _round_up(bn, 8)
        in_b = 2 * bn * cb_sub * _round_up(kt, 128) * itemsize   # double-buffered input
        out_b = 2 * 2 * bn8 * cb_lane * itemsize                 # 2 outputs x 2 buffers
        scr_b = 2 * bn8 * cb_lane * 4 if multi else 0            # f32 sum/max scratch
        return in_b + out_b + scr_b

    bn_min = nb if nb < pack else pack

    # Spatial chunk kt.
    if est(bn_min, hw, False) <= target:
        kt, n_k, needs_mask = hw, 1, False
    else:
        fixed = est(bn_min, 0, True)
        per_lane = 2 * bn_min * cb_sub * itemsize
        avail = max(target - fixed, 0)
        kt = max(128, (avail // per_lane) // 128 * 128)
        kt = min(kt, _round_up(hw, 128))
        n_k = -(-hw // kt)
        if n_k == 1:
            kt, needs_mask = hw, False
        else:
            needs_mask = (hw % kt) != 0
    multi = n_k > 1

    # Batch-row block bn (multiple of pack, or the full row extent).
    if nb <= pack:
        bn = nb
    else:
        row_cost = (2 * cb_sub * _round_up(kt, 128) * itemsize
                    + 4 * cb_lane * itemsize
                    + (2 * cb_lane * 4 if multi else 0))
        max_rows = max(pack, (target // row_cost) // pack * pack)
        bn = min(max_rows, _round_up(nb, pack))
        # Keep at least 2 row-blocks so v7x's two TensorCores both get work.
        if nb >= 2 * pack:
            bn = min(bn, _round_up(-(-nb // 2), pack))
        if bn >= nb:
            bn = nb
    return bn, kt, n_k, needs_mask, est(bn, kt, multi)


def _pool_kernel_single(x_ref, avg_ref, max_ref, *, inv_hw):
    # x_ref: (bn, CB, HW) — the whole spatial extent in one block.
    x = x_ref[...]
    s = jnp.sum(x.astype(jnp.float32), axis=-1)          # (bn, CB) f32
    m = jnp.max(x, axis=-1)                               # (bn, CB), exact in input dtype
    avg_ref[...] = (s * inv_hw).astype(avg_ref.dtype)
    max_ref[...] = m.astype(max_ref.dtype)


def _pool_kernel_multi(x_ref, avg_ref, max_ref, sum_acc, max_acc,
                       *, inv_hw, hw, kt, needs_mask):
    # x_ref: (bn, CB, kt) chunk of the flattened spatial (lane) axis.
    k = pl.program_id(1)
    x = x_ref[...]
    if needs_mask:
        lane = jax.lax.broadcasted_iota(jnp.int32, x.shape, dimension=2)
        valid = (k * kt + lane) < hw
        xs = jnp.where(valid, x.astype(jnp.float32), 0.0)
        xm = jnp.where(valid, x, -jnp.inf)
    else:
        xs = x.astype(jnp.float32)
        xm = x
    psum = jnp.sum(xs, axis=-1)                           # (bn, CB) f32
    pmax = jnp.max(xm, axis=-1).astype(jnp.float32)       # (bn, CB) f32

    @pl.when(k == 0)
    def _init():
        sum_acc[...] = psum
        max_acc[...] = pmax

    @pl.when(k != 0)
    def _accum():
        sum_acc[...] = sum_acc[...] + psum
        max_acc[...] = jnp.maximum(max_acc[...], pmax)

    @pl.when(k == pl.num_programs(1) - 1)
    def _finalize():
        avg_ref[...] = (sum_acc[...] * inv_hw).astype(avg_ref.dtype)
        max_ref[...] = max_acc[...].astype(max_ref.dtype)


def adaptive_concat_pool2d(x, *, vmem_block_budget=None):
    """x: (N, C, H, W) -> (N, 2C, 1, 1) matching torch.cat([avgpool1, maxpool1], 1)."""
    n, c, h, w = x.shape
    hw = h * w
    itemsize = jnp.dtype(x.dtype).itemsize
    pack = 8 * max(1, 4 // itemsize)      # sublane pack: f32 -> 8, bf16 -> 16, int8 -> 32

    target, limit_default, limit_max = _vmem_budgets()
    if vmem_block_budget is not None:
        target = int(vmem_block_budget)

    # Free metadata-only reshape; for small C fold batch rows into the channel
    # (sublane) axis so the VMEM tile isn't padded C -> pack.
    if c < pack and (n * c) % pack == 0:
        nb, cb = (n * c) // pack, pack
    else:
        nb, cb = n, c
    x3 = x.reshape(nb, cb, hw)

    bn, kt, n_k, needs_mask, est_bytes = _choose_tiles(nb, cb, hw, itemsize, pack, target)
    vmem_limit = int(min(max(limit_default, est_bytes + (8 << 20)), limit_max))

    cost = pl.CostEstimate(
        flops=2 * n * c * hw,
        transcendentals=0,
        bytes_accessed=n * c * hw * itemsize + 2 * n * c * itemsize,
    )
    out_shape = (jax.ShapeDtypeStruct((nb, cb), x.dtype),
                 jax.ShapeDtypeStruct((nb, cb), x.dtype))

    if n_k == 1:
        kernel = functools.partial(_pool_kernel_single, inv_hw=1.0 / hw)
        grid = (pl.cdiv(nb, bn),)
        in_specs = [pl.BlockSpec((bn, cb, hw), lambda i: (i, 0, 0))]
        out_specs = [pl.BlockSpec((bn, cb), lambda i: (i, 0)),
                     pl.BlockSpec((bn, cb), lambda i: (i, 0))]
        scratch = ()
        dims = ("parallel",)
    else:
        kernel = functools.partial(_pool_kernel_multi, inv_hw=1.0 / hw,
                                   hw=hw, kt=kt, needs_mask=needs_mask)
        grid = (pl.cdiv(nb, bn), n_k)
        in_specs = [pl.BlockSpec((bn, cb, kt), lambda i, k: (i, 0, k))]
        out_specs = [pl.BlockSpec((bn, cb), lambda i, k: (i, 0)),
                     pl.BlockSpec((bn, cb), lambda i, k: (i, 0))]
        scratch = [pltpu.VMEM((bn, cb), jnp.float32),   # running sum
                   pltpu.VMEM((bn, cb), jnp.float32)]   # running max
        dims = ("parallel", "arbitrary")

    avg, mx = pl.pallas_call(
        kernel,
        out_shape=out_shape,
        grid_spec=pltpu.PrefetchScalarGridSpec(
            num_scalar_prefetch=0,
            grid=grid,
            in_specs=in_specs,
            out_specs=out_specs,
            scratch_shapes=scratch,
        ),
        compiler_params=pltpu.CompilerParams(
            dimension_semantics=dims,
            vmem_limit_bytes=vmem_limit,
        ),
        cost_estimate=cost,
    )(x3)

    avg = avg.reshape(n, c)
    mx = mx.reshape(n, c)
    # Tiny (2*N*C element) epilogue: channel concat + (N, 2C, 1, 1) layout.
    return jnp.concatenate([avg, mx], axis=1).reshape(n, 2 * c, 1, 1)


def _ref_concat_pool(x):
    return jnp.concatenate(
        [jnp.mean(x, axis=(2, 3), keepdims=True),
         jnp.max(x, axis=(2, 3), keepdims=True)],
        axis=1,
    )


if __name__ == "__main__":
    key0, key1 = jax.random.split(jax.random.PRNGKey(0))

    # Small NCHW input consistent with the module.
    x = jax.random.normal(key0, (2, 4, 16, 16), dtype=jnp.float32)
    out = adaptive_concat_pool2d(x)
    jax.block_until_ready(out)
    assert out.shape == (2, 8, 1, 1), out.shape
    assert jnp.allclose(out, _ref_concat_pool(x), atol=1e-5, rtol=1e-5), "mismatch (single-chunk)"

    # Exercise the chunked-reduction path (ragged HW tail masking) by forcing
    # a tiny per-block VMEM budget.
    x2 = jax.random.normal(key1, (4, 16, 10, 30), dtype=jnp.float32)
    out2 = adaptive_concat_pool2d(x2, vmem_block_budget=128 * 1024)
    jax.block_until_ready(out2)
    assert out2.shape == (4, 32, 1, 1), out2.shape
    assert jnp.allclose(out2, _ref_concat_pool(x2), atol=1e-5, rtol=1e-5), "mismatch (multi-chunk)"

    print("KERNEL_OK")
</pallas_src>

<mosaic_0001>
module attributes {stable_mosaic.version = 11 : i64} {
  func.func @_pool_kernel_single(%arg0: i32, %arg1: memref<1x8x256xf32, #tpu.memory_space<vmem>>, %arg2: memref<1x8xf32, #tpu.memory_space<vmem>>, %arg3: memref<1x8xf32, #tpu.memory_space<vmem>>) attributes {dimension_semantics = [#tpu.dimension_semantics<parallel>], iteration_bounds = array<i64: 1>, scalar_prefetch = 0 : i64, scratch_operands = 0 : i64, tpu.core_type = #tpu.core_type<tc>, window_params = [{transform_indices = @transform_0, window_bounds = array<i64: 1, 8, 256>}, {transform_indices = @transform_1, window_bounds = array<i64: 1, 8>}, {transform_indices = @transform_2, window_bounds = array<i64: 1, 8>}]} {
    %c0 = arith.constant 0 : index
    %c0_0 = arith.constant 0 : index
    %c0_1 = arith.constant 0 : index
    %0 = vector.load %arg1[%c0, %c0_0, %c0_1] : memref<1x8x256xf32, #tpu.memory_space<vmem>>, vector<1x8x256xf32>
    %cst = arith.constant dense<0.000000e+00> : vector<1x8xf32>
    %1 = vector.multi_reduction <add>, %0, %cst [2] : vector<1x8x256xf32> to vector<1x8xf32>
    %cst_2 = arith.constant dense<0xFF800000> : vector<1x8xf32>
    %2 = vector.multi_reduction <maximumf>, %0, %cst_2 [2] : vector<1x8x256xf32> to vector<1x8xf32>
    %cst_3 = arith.constant 3.906250e-03 : f32
    %3 = vector.broadcast %cst_3 : f32 to vector<1x8xf32>
    %4 = arith.mulf %1, %3 : vector<1x8xf32>
    %c0_4 = arith.constant 0 : index
    %c0_5 = arith.constant 0 : index
    %5 = vector.load %arg2[%c0_4, %c0_5] : memref<1x8xf32, #tpu.memory_space<vmem>>, vector<1x8xf32>
    tpu.vector_store %arg2[%c0_4, %c0_5], %4 {strides = array<i32>} : memref<1x8xf32, #tpu.memory_space<vmem>>, vector<1x8xf32>,
    %c0_6 = arith.constant 0 : index
    %c0_7 = arith.constant 0 : index
    %6 = vector.load %arg3[%c0_6, %c0_7] : memref<1x8xf32, #tpu.memory_space<vmem>>, vector<1x8xf32>
    tpu.vector_store %arg3[%c0_6, %c0_7], %2 {strides = array<i32>} : memref<1x8xf32, #tpu.memory_space<vmem>>, vector<1x8xf32>,
    return
  }
  func.func @transform_0(%arg0: i32) -> (i32, i32, i32) {
    %c0_i32 = arith.constant 0 : i32
    %c0_i32_0 = arith.constant 0 : i32
    %c0_i32_1 = arith.constant 0 : i32
    return %arg0, %c0_i32, %c0_i32_0 : i32, i32, i32
  }
  func.func @transform_1(%arg0: i32) -> (i32, i32) {
    %c0_i32 = arith.constant 0 : i32
    %c0_i32_0 = arith.constant 0 : i32
    return %arg0, %c0_i32 : i32, i32
  }
  func.func @transform_2(%arg0: i32) -> (i32, i32) {
    %c0_i32 = arith.constant 0 : i32
    %c0_i32_0 = arith.constant 0 : i32
    return %arg0, %c0_i32 : i32, i32
  }
}

</mosaic_0001>

<bundles_post_ra>
// kernel: tpu_custom_call.1
= control target key start
LH: loop header
LB: loop body
LE: loop exit
PB: predicated region body
PF: predicated region fallthrough
CT: control target
= control target key end

     0   :  { %8 = vsyncpa [#allocation3], 0  ;;  %s218_s0 = inlined_call_operand.hbm [shape: f32[1,8,256], index: 0, kind: input, shape index: {}]   ;;  %s219_s1 = inlined_call_operand.hbm [shape: f32[1,8], index: 1, kind: output, shape index: {0}]   ;;  %s220_s2 = inlined_call_operand.hbm [shape: f32[1,8], index: 2, kind: output, shape index: {1}]  }
   0x1   :  { %9 = vsyncpa [#allocation4], 0 }
   0x2   :  { %10 = vsyncpa [#allocation7], 0  ;;  %s154_s9 = smov [#allocation2]   ;;  %s82_s13 = scalar_lea.hbm %s218_s0, 256 }
   0x3   :  { %s17_s10 = sshll.u32 %s154_s9, 4  ;;  %p83_p0 = scmp.ne.s32.totalorder %s218_s0, %s82_s13  ;;  %s18_s10 = int_to_ptr.vmem [resolvable:$true] %s17_s10 }
   0x4   :  { %p86_p1 = scmp.lt.u32.totalorder %s82_s13, %s218_s0 }
   0x6   :  { %p88_p2 = pnand %p86_p1, %p83_p0 }
   0x8   :  { %91 = shalt.err (!%p88_p2)
}
   0x9   :  { %s92_s18 = scalar_lea.vmem %s18_s10, 256  ;;  %p97_p4 = scmp.lt.s32.totalorder %s18_s10, %s18_s10 }
   0xa   :  { %p93_p3 = scmp.ne.s32.totalorder %s18_s10, %s92_s18  ;;  %p98_p5 = scmp.lt.s32.totalorder %s92_s18, %s92_s18 }
   0xc   :  { %p99_p6 = por %p98_p5, %p97_p4 }
   0xe   :  { %p100_p7 = pnand %p99_p6, %p93_p3 }
  0x10   :  { %103 = shalt.err (!%p100_p7)
}
  0x11   :  { %20 = dma.hbm_to_vmem [thread:$0]  %s218_s0, 256, %s18_s10, [#allocation3]  }
  0x12   :  { %148 = dma.done.wait [#allocation3], 256  }
  0x13   :  { %149 = vsyncadd [#allocation3], 4294967040  ;;  %v24_v0 = vld [vmem:[#allocation2] sm:$0xff]  ;;  %v25_v1 = vld [vmem:[#allocation2 + $0x8] sm:$0xff]  ;;  %v34_v4 = vlaneseq  ;;  %s155_s21 = smov [#allocation5]   ;;  %vm41_vm0 = vcmask 57344  }
  0x14   :  { %v26_v2 = vadd.f32 %v25_v1, %v24_v0  ;;  %v29_v3 = vmax.f32 %v24_v0, %v25_v1  ;;  %s56_s22 = sshll.u32 %s155_s21, 4  ;;  %s156_s23 = smov [#allocation6]   ;;  %s57_s22 = int_to_ptr.vmem [resolvable:$true] %s56_s22 }
  0x15   :  { %v35_v5 = vand.u32 127, %v34_v4  ;;  %v37_v6 = vshrl.u32 %v34_v4, 7  ;;  %s66_s24 = sshll.u32 %s156_s23, 4  ;;  %s104_s0 = scalar_lea.vmem %s57_s22, 16  ;;  %s185_s24 = int_to_ptr.vmem [resolvable:$true] %s66_s24 }
  0x16   :  { %27 = vadd.xlane.f32.xlu0 %v26_v2  ;;  %p105_p8 = scmp.ne.s32.totalorder %s57_s22, %s104_s0  ;;  %s108_s25 = scalar_lea.vmem %s57_s22, 32 }
  0x17   :  { %v38_v7 = vsub.s32 %v35_v5, %v37_v6  ;;  %p109_p9 = scmp.lt.s32.totalorder %s57_s22, %s57_s22  ;;  %p110_p10 = scmp.lt.s32.totalorder %s108_s25, %s104_s0 }
  0x19   :  { %p111_p11 = por %p110_p10, %p109_p9 }
  0x1a   :  { %30 = vmax.xlane.f32.xlu0 %v29_v3 }
  0x1b   :  { %p112_p12 = pnand %p111_p11, %p105_p8 }
  0xa3   :  { %v28_v8 = vpop.xlane.xlu0 %27 }
  0xa4   :  { %v32_v9 = vmul.f32 0.00390625, %v28_v8 }
  0xa6   :  { %v39_v10 = vrot.slane %v32_v9, %v38_v7 }
  0xa7   :  { %v31_v11 = vpop.xlane.xlu0 %30 }
  0xa8   :  { %v47_v12 = vrot.slane %v31_v11, %v38_v7  ;;  %42 = vst.msk [vmem:[#allocation5] sm:$0x1] %vm41_vm0, %v39_v10 }
  0xa9   :  { %115 = shalt.err (!%p112_p12)
}
  0xaa   :  { %s116_s28 = scalar_lea.hbm %s219_s1, 16 }
  0xab   :  { %p117_p13 = scmp.ne.s32.totalorder %s219_s1, %s116_s28  ;;  %p120_p0 = scmp.lt.u32.totalorder %s116_s28, %s219_s1 }
  0xad   :  { %p122_p1 = pnand %p120_p0, %p117_p13 }
  0xaf   :  { %125 = shalt.err (!%p122_p1)
}
  0xb0   :  { %59 = dma.vmem_to_hbm [thread:$0]  %s57_s22, 16, %s219_s1, [#allocation4]   ;;  %49 = vst.msk [vmem:[#allocation6] sm:$0x1] %vm41_vm0, %v47_v12 }
  0xb1   :  { %s126_s7 = scalar_lea.vmem %s185_s24, 16  ;;  %s130_s8 = scalar_lea.vmem %s185_s24, 32 }
  0xb2   :  { %p127_p2 = scmp.ne.s32.totalorder %s185_s24, %s126_s7  ;;  %p131_p3 = scmp.lt.s32.totalorder %s185_s24, %s185_s24 }
  0xb3   :  { %p132_p4 = scmp.lt.s32.totalorder %s130_s8, %s126_s7 }
  0xb5   :  { %p133_p5 = por %p132_p4, %p131_p3 }
  0xb7   :  { %p134_p6 = pnand %p133_p5, %p127_p2 }
  0xb9   :  { %137 = shalt.err (!%p134_p6)
}
  0xba   :  { %s138_s11 = scalar_lea.hbm %s220_s2, 16 }
  0xbb   :  { %p139_p7 = scmp.ne.s32.totalorder %s220_s2, %s138_s11  ;;  %p142_p8 = scmp.lt.u32.totalorder %s138_s11, %s220_s2 }
  0xbd   :  { %p144_p9 = pnand %p142_p8, %p139_p7 }
  0xbf   :  { %147 = shalt.err (!%p144_p9)
}
  0xc0   :  { %69 = dma.vmem_to_hbm [thread:$0]  %s185_s24, 16, %s220_s2, [#allocation7]  }
  0xc1   :  { %150 = dma.done.wait [#allocation4], 16  }
  0xc2   :  { %151 = vsyncadd [#allocation4], 4294967280 }
  0xc3   :  { %152 = dma.done.wait [#allocation7], 16  }
  0xc4   :  { %153 = vsyncadd [#allocation7], 4294967280 }
  0xc5   :  { %76 = vsyncpa [#allocation3], 1 }
  0xc6   :  { %77 = vsyncpa [#allocation4], 1 }
  0xc7   :  { %78 = vsyncpa [#allocation7], 1 }

</bundles_post_ra>
